<compile_context>
chip_gen: v5e
topology: v5e:2x2
jax: 0.10.0
libtpu: 0.0.40
codegen_flags: <defaults>
</compile_context>

<pallas_src>
import jax
import jax.numpy as jnp
from jax.experimental import pallas as pl
from jax.experimental.pallas import tpu as pltpu


def _round_up(x, m):
    return (x + m - 1) // m * m


def mlp2_kernel(x_ref, w1_ref, scale_ref, shift_ref, w2_ref, b_ref, o_ref):
    # Layer 1: Linear (no bias) -> folded eval-mode BatchNorm -> ReLU.
    h = jnp.dot(x_ref[...], w1_ref[...], preferred_element_type=jnp.float32)
    h = h * scale_ref[...] + shift_ref[...]
    h = jnp.maximum(h, 0.0)
    # Layer 2: Linear (+ bias).
    o_ref[...] = (jnp.dot(h, w2_ref[...], preferred_element_type=jnp.float32)
                  + b_ref[...])


def mlp_forward(x, w1, bn_gamma, bn_beta, bn_mean, bn_var, w2, b2,
                *, eps=1e-5, tile_m=128):
    """MLP forward (GraphGym defaults, num_layers=2, eval-mode BN).

    x: (M, Din) f32
    w1: (Dhid, Din)  -- PyTorch nn.Linear weight layout (first layer, bias=False)
    bn_gamma/bn_beta/bn_mean/bn_var: (Dhid,)
    w2: (Dout, Dhid) -- PyTorch nn.Linear weight layout (final layer)
    b2: (Dout,)
    Returns (M, Dout) f32.
    """
    M, din = x.shape
    dhid = w1.shape[0]
    dout = w2.shape[0]

    # Fold eval-mode BatchNorm1d into a per-feature affine.
    inv_std = jax.lax.rsqrt(bn_var.astype(jnp.float32) + jnp.float32(eps))
    scale = bn_gamma.astype(jnp.float32) * inv_std
    shift = bn_beta.astype(jnp.float32) - bn_mean.astype(jnp.float32) * scale

    # Lane-dense padding: feature dims -> multiples of 128, rows -> multiple of tile_m.
    din_p = _round_up(din, 128)
    dhid_p = _round_up(dhid, 128)
    dout_p = _round_up(dout, 128)
    m_p = _round_up(M, tile_m)

    f32 = jnp.float32
    xp = jnp.zeros((m_p, din_p), f32).at[:M, :din].set(x.astype(f32))
    w1p = jnp.zeros((din_p, dhid_p), f32).at[:din, :dhid].set(
        jnp.transpose(w1).astype(f32))
    w2p = jnp.zeros((dhid_p, dout_p), f32).at[:dhid, :dout].set(
        jnp.transpose(w2).astype(f32))
    sp = jnp.zeros((1, dhid_p), f32).at[0, :dhid].set(scale)
    tp = jnp.zeros((1, dhid_p), f32).at[0, :dhid].set(shift)
    bp = jnp.zeros((1, dout_p), f32).at[0, :dout].set(b2.astype(f32))

    grid = (m_p // tile_m,)

    def resident(shape):
        # Weights / affine params / bias: same block every grid step (VMEM resident).
        return pl.BlockSpec(shape, lambda i: (0, 0))

    out_p = pl.pallas_call(
        mlp2_kernel,
        out_shape=jax.ShapeDtypeStruct((m_p, dout_p), f32),
        grid=grid,
        in_specs=[
            pl.BlockSpec((tile_m, din_p), lambda i: (i, 0)),   # x row tile
            resident((din_p, dhid_p)),                         # W1 (transposed)
            resident((1, dhid_p)),                             # BN scale
            resident((1, dhid_p)),                             # BN shift
            resident((dhid_p, dout_p)),                        # W2 (transposed)
            resident((1, dout_p)),                             # b2
        ],
        out_specs=pl.BlockSpec((tile_m, dout_p), lambda i: (i, 0)),
        compiler_params=pltpu.CompilerParams(
            # Row tiles are independent -> megacore-parallel on v7x.
            dimension_semantics=("parallel",),
            # Actual footprint is well under 1 MiB at these shapes; 32 MiB is
            # safely inside v7x's 64 MiB physical VMEM and v5e/v6e's 128 MiB.
            vmem_limit_bytes=32 * 1024 * 1024,
        ),
    )(xp, w1p, sp, tp, w2p, bp)

    return out_p[:M, :dout]


if __name__ == "__main__":
    # Small shapes consistent with the module: M node/row features of width Din,
    # dim_inner defaults to dim_in, final projection to Dout.
    M, DIN, DHID, DOUT = 256, 32, 32, 16
    EPS = 1e-5  # cfg.bn.eps default

    key = jax.random.PRNGKey(0)
    ks = jax.random.split(key, 8)

    x = jax.random.normal(ks[0], (M, DIN), jnp.float32)
    # First GeneralLayer: Linear(DIN, DHID, bias=False) + BatchNorm1d(DHID) + ReLU.
    w1 = jax.random.normal(ks[1], (DHID, DIN), jnp.float32) / jnp.sqrt(DIN)
    gamma = 1.0 + 0.1 * jax.random.normal(ks[2], (DHID,), jnp.float32)
    beta = 0.1 * jax.random.normal(ks[3], (DHID,), jnp.float32)
    run_mean = 0.1 * jax.random.normal(ks[4], (DHID,), jnp.float32)
    run_var = jnp.abs(jax.random.normal(ks[5], (DHID,), jnp.float32)) + 0.5
    # Final Linear(DHID, DOUT, bias=True).
    w2 = jax.random.normal(ks[6], (DOUT, DHID), jnp.float32) / jnp.sqrt(DHID)
    b2 = 0.1 * jax.random.normal(ks[7], (DOUT,), jnp.float32)

    out = mlp_forward(x, w1, gamma, beta, run_mean, run_var, w2, b2, eps=EPS)
    jax.block_until_ready(out)

    # Pure-JAX reference of the PyTorch forward (eval-mode BN).
    h = x @ w1.T
    h = (h - run_mean) / jnp.sqrt(run_var + EPS) * gamma + beta
    h = jnp.maximum(h, 0.0)
    ref = h @ w2.T + b2
    assert jnp.allclose(out, ref, atol=1e-4, rtol=1e-4), "mismatch vs reference"

    print("KERNEL_OK")
</pallas_src>

<mosaic_0001>
module attributes {stable_mosaic.version = 11 : i64} {
  func.func @mlp2_kernel(%arg0: i32, %arg1: memref<128x128xf32, #tpu.memory_space<vmem>>, %arg2: memref<128x128xf32, #tpu.memory_space<vmem>>, %arg3: memref<1x128xf32, #tpu.memory_space<vmem>>, %arg4: memref<1x128xf32, #tpu.memory_space<vmem>>, %arg5: memref<128x128xf32, #tpu.memory_space<vmem>>, %arg6: memref<1x128xf32, #tpu.memory_space<vmem>>, %arg7: memref<128x128xf32, #tpu.memory_space<vmem>>) attributes {dimension_semantics = [#tpu.dimension_semantics<parallel>], iteration_bounds = array<i64: 2>, scalar_prefetch = 0 : i64, scratch_operands = 0 : i64, tpu.core_type = #tpu.core_type<tc>, window_params = [{transform_indices = @transform_0, window_bounds = array<i64: 128, 128>}, {pipeline_mode = #tpu.pipeline_mode<synchronous>, transform_indices = @transform_1, window_bounds = array<i64: 128, 128>}, {pipeline_mode = #tpu.pipeline_mode<synchronous>, transform_indices = @transform_2, window_bounds = array<i64: 1, 128>}, {pipeline_mode = #tpu.pipeline_mode<synchronous>, transform_indices = @transform_3, window_bounds = array<i64: 1, 128>}, {pipeline_mode = #tpu.pipeline_mode<synchronous>, transform_indices = @transform_4, window_bounds = array<i64: 128, 128>}, {pipeline_mode = #tpu.pipeline_mode<synchronous>, transform_indices = @transform_5, window_bounds = array<i64: 1, 128>}, {transform_indices = @transform_6, window_bounds = array<i64: 128, 128>}]} {
    %c0 = arith.constant 0 : index
    %c0_0 = arith.constant 0 : index
    %0 = vector.load %arg1[%c0, %c0_0] : memref<128x128xf32, #tpu.memory_space<vmem>>, vector<128x128xf32>
    %c0_1 = arith.constant 0 : index
    %c0_2 = arith.constant 0 : index
    %1 = vector.load %arg2[%c0_1, %c0_2] : memref<128x128xf32, #tpu.memory_space<vmem>>, vector<128x128xf32>
    %cst = arith.constant dense<0.000000e+00> : vector<128x128xf32>
    %2 = tpu.matmul %0, %1, %cst {dimension_numbers = #tpu.dot_dimension_numbers<[1], [0], [0], [1], [0, 0, 1, 1], [], []>} : vector<128x128xf32>, vector<128x128xf32>, vector<128x128xf32> -> vector<128x128xf32>
    %c0_3 = arith.constant 0 : index
    %c0_4 = arith.constant 0 : index
    %3 = vector.load %arg3[%c0_3, %c0_4] : memref<1x128xf32, #tpu.memory_space<vmem>>, vector<1x128xf32>
    %4 = vector.broadcast %3 : vector<1x128xf32> to vector<128x128xf32>
    %5 = arith.mulf %2, %4 : vector<128x128xf32>
    %c0_5 = arith.constant 0 : index
    %c0_6 = arith.constant 0 : index
    %6 = vector.load %arg4[%c0_5, %c0_6] : memref<1x128xf32, #tpu.memory_space<vmem>>, vector<1x128xf32>
    %7 = vector.broadcast %6 : vector<1x128xf32> to vector<128x128xf32>
    %8 = arith.addf %5, %7 : vector<128x128xf32>
    %cst_7 = arith.constant 0.000000e+00 : f32
    %9 = vector.broadcast %cst_7 : f32 to vector<128x128xf32>
    %10 = arith.maximumf %8, %9 : vector<128x128xf32>
    %c0_8 = arith.constant 0 : index
    %c0_9 = arith.constant 0 : index
    %11 = vector.load %arg5[%c0_8, %c0_9] : memref<128x128xf32, #tpu.memory_space<vmem>>, vector<128x128xf32>
    %cst_10 = arith.constant dense<0.000000e+00> : vector<128x128xf32>
    %12 = tpu.matmul %10, %11, %cst_10 {dimension_numbers = #tpu.dot_dimension_numbers<[1], [0], [0], [1], [0, 0, 1, 1], [], []>} : vector<128x128xf32>, vector<128x128xf32>, vector<128x128xf32> -> vector<128x128xf32>
    %c0_11 = arith.constant 0 : index
    %c0_12 = arith.constant 0 : index
    %13 = vector.load %arg6[%c0_11, %c0_12] : memref<1x128xf32, #tpu.memory_space<vmem>>, vector<1x128xf32>
    %14 = vector.broadcast %13 : vector<1x128xf32> to vector<128x128xf32>
    %15 = arith.addf %12, %14 : vector<128x128xf32>
    %c0_13 = arith.constant 0 : index
    %c0_14 = arith.constant 0 : index
    %16 = vector.load %arg7[%c0_13, %c0_14] : memref<128x128xf32, #tpu.memory_space<vmem>>, vector<128x128xf32>
    tpu.vector_store %arg7[%c0_13, %c0_14], %15 {strides = array<i32>} : memref<128x128xf32, #tpu.memory_space<vmem>>, vector<128x128xf32>,
    return
  }
  func.func @transform_0(%arg0: i32) -> (i32, i32) {
    %c0_i32 = arith.constant 0 : i32
    %c0_i32_0 = arith.constant 0 : i32
    return %arg0, %c0_i32 : i32, i32
  }
  func.func @transform_1(%arg0: i32) -> (i32, i32) {
    %c0_i32 = arith.constant 0 : i32
    %c0_i32_0 = arith.constant 0 : i32
    %c0_i32_1 = arith.constant 0 : i32
    return %c0_i32, %c0_i32_0 : i32, i32
  }
  func.func @transform_2(%arg0: i32) -> (i32, i32) {
    %c0_i32 = arith.constant 0 : i32
    %c0_i32_0 = arith.constant 0 : i32
    %c0_i32_1 = arith.constant 0 : i32
    return %c0_i32, %c0_i32_0 : i32, i32
  }
  func.func @transform_3(%arg0: i32) -> (i32, i32) {
    %c0_i32 = arith.constant 0 : i32
    %c0_i32_0 = arith.constant 0 : i32
    %c0_i32_1 = arith.constant 0 : i32
    return %c0_i32, %c0_i32_0 : i32, i32
  }
  func.func @transform_4(%arg0: i32) -> (i32, i32) {
    %c0_i32 = arith.constant 0 : i32
    %c0_i32_0 = arith.constant 0 : i32
    %c0_i32_1 = arith.constant 0 : i32
    return %c0_i32, %c0_i32_0 : i32, i32
  }
  func.func @transform_5(%arg0: i32) -> (i32, i32) {
    %c0_i32 = arith.constant 0 : i32
    %c0_i32_0 = arith.constant 0 : i32
    %c0_i32_1 = arith.constant 0 : i32
    return %c0_i32, %c0_i32_0 : i32, i32
  }
  func.func @transform_6(%arg0: i32) -> (i32, i32) {
    %c0_i32 = arith.constant 0 : i32
    %c0_i32_0 = arith.constant 0 : i32
    return %arg0, %c0_i32 : i32, i32
  }
}

</mosaic_0001>

<bundles_post_ra>
// kernel: tpu_custom_call.1
= control target key start
LH: loop header
LB: loop body
LE: loop exit
PB: predicated region body
PF: predicated region fallthrough
CT: control target
= control target key end

     0   :  { %11 = vsyncpa [#allocation3], 0  ;;  %s1234_s0 = inlined_call_operand.hbm [shape: f32[256,128], index: 0, kind: input, shape index: {}]   ;;  %s1235_s1 = inlined_call_operand.hbm [shape: f32[128,128], index: 1, kind: input, shape index: {}]   ;;  %s1236_s2 = inlined_call_operand.vmem [shape: f32[1,128], index: 2, kind: input, shape index: {}]   ;;  %s1237_s3 = inlined_call_operand.vmem [shape: f32[1,128], index: 3, kind: input, shape index: {}]   ;;  %s1238_s4 = inlined_call_operand.hbm [shape: f32[128,128], index: 4, kind: input, shape index: {}]   ;;  %s1239_s5 = inlined_call_operand.vmem [shape: f32[1,128], index: 5, kind: input, shape index: {}]   ;;  %s1240_s6 = inlined_call_operand.hbm [shape: f32[256,128], index: 6, kind: output, shape index: {}]  }
   0x1   :  { %13 = vsyncpa [#allocation3 + $0x1], 0 }
   0x2   :  { %14 = vsyncpa [#allocation6], 0 }
   0x3   :  { %15 = vsyncpa [#allocation4], 0 }
   0x4   :  { %17 = vsyncpa [#allocation4 + $0x1], 0  ;;  %s998_s21 = smov 0   ;;  %s1000_s22 = smov 0  }
   0x5   :  { %s1002_s23 = smov 0   ;;  %s1004_s24 = smov 0  }
   0x6 LB: > { %s1019_s25 = sadd.s32 4294967295, %s955_s24   ;;  %s669_s26 = sadd.s32 4294967294, %s955_s24   ;;  %s955_s24 = sphi %s1004_s24, %s1254_s24   ;;  %s951_s23 = sphi %s1002_s23, %s1253_s23   ;;  %s947_s22 = sphi %s1000_s22, %s1252_s22   ;;  %s943_s21 = sphi %s998_s21, %s1251_s21  }
   0x7   : > { %p43_p0 = scmp.ne.s32.totalorder %s947_s22, %s943_s21  ;;  %p44_p1 = scmp.eq.s32.totalorder %s1019_s25, 0 }
   0x8   : > { %p172_p2 = scmp.eq.s32.totalorder %s1019_s25, 1  ;;  %p178_p3 = scmp.eq.s32.totalorder %s669_s26, 1 }
   0x9   : > { %p1028_p4 = por %p44_p1, %p43_p0  ;;  %p670_p5 = scmp.ge.s32.totalorder %s955_s24, 1 }
   0xa   : > { %p1033_p6 = por %p178_p3, %p43_p0  ;;  %p185_p7 = scmp.lt.s32.totalorder %s955_s24, 3 }
   0xb   : > { %s196_s7 = sshll.u32 %s1235_s1, 4  ;;  %s957_s9 = smov [#allocation5]   ;;  %s197_s7 = int_to_ptr.hbm [resolvable:$true] %s196_s7 }
   0xc   : > { %p1041_p8 = pnand %p670_p5, %p185_p7  ;;  %s198_s10 = sshll.u32 %s957_s9, 4  ;;  %s199_s10 = int_to_ptr.vmem [resolvable:$true] %s198_s10 }
   0xd   : > { %s216_s13 = sshll.u32 %s1238_s4, 4  ;;  %s1241_s14 = smov 128   ;;  %s217_s13 = int_to_ptr.hbm [resolvable:$true] %s216_s13 }
   0xe   : > { %p733_p9 = pneg %p1041_p8  ;;  %s1242_s15 = smov 8  }
   0xf   : > { %s960_s16 = smov [#allocation7]   ;;  %s1060_s18 = sadd.s32 1, %s955_s24  }
  0x10   : > { %p734_p10 = pnand %p733_p9, %p44_p1  ;;  %s218_s17 = sshll.u32 %s960_s16, 4  ;;  %s219_s17 = int_to_ptr.vmem [resolvable:$true] %s218_s17 }
  0x11   : > { %s30_s19 = sadd.s32 1, %s951_s23  ;;  %s27_s20 = ssub.s32 %s955_s24, %s1060_s18 }
  0x12   : > { %736 = dma.hbm_to_vmem [thread:$0]  (!%p734_p10), %s197_s7, 2048, %s199_s10, [#allocation6], %s1241_s14, %s1241_s14, %s1242_s15  }
  0x13   : > { %739 = dma.hbm_to_vmem [thread:$0]  (!%p734_p10), %s217_s13, 2048, %s219_s17, [#allocation6], %s1241_s14, %s1241_s14, %s1242_s15  }
  0x14   : > { %p37_p12 = scmp.ne.s32.totalorder %s951_s23, %s947_s22  ;;  %p28_p13 = scmp.eq.s32.totalorder %s27_s20, 0 }
  0x15   : > { %p38_p0 = scmp.eq.s32.totalorder %s955_s24, 0  ;;  %p750_p5 = scmp.lt.s32.totalorder %s955_s24, 2 }
  0x16   : > { %p1070_p3 = por %p172_p2, %p37_p12  ;;  %s235_s30 = sand.u32 1, %s951_s23  }
  0x17   : > { %s1076_s29 = scalar_select %p28_p13, %s951_s23, %s30_s19  }
  0x18   : > { %p39_p7 = por %p38_p0, %p37_p12  ;;  %s674_s7 = sshll.u32 %s235_s30, 7 }
  0x19   : > { %s687_s9 = sshll.u32 %s955_s24, 7  ;;  %s239_s13 = scalar_lea.vmem [#allocation2], %s674_s7 }
  0x1a   : > { %s244_s12 = scalar_lea.hbm %s1234_s0, %s687_s9  ;;  %s247_s16 = sshll.u32 %s239_s13, 4  ;;  %s248_s16 = int_to_ptr.vmem [resolvable:$true] %s247_s16 }
  0x1b   : > { %s245_s17 = sshll.u32 %s244_s12, 4  ;;  %p1083_p2 = pnand %p750_p5, %p39_p7  ;;  %s246_s17 = int_to_ptr.hbm [resolvable:$true] %s245_s17 }
  0x1c   : > { %s236_s19 = scalar_lea.sflag [#allocation3], %s235_s30  ;;  %s855_s14 = sshra.s32 %s246_s17, 4  ;;  %s856_s14 = int_to_ptr.hbm [resolvable:$true] %s855_s14 }
  0x1d   : > { %s857_s15 = scalar_lea.hbm %s856_s14, 128  ;;  %p859_p10 = pneg %p1083_p2 }
  0x1e   : > { %p858_p9 = scmp.ne.s32.totalorder %s856_s14, %s857_s15  ;;  %s862_s10 = scalar_lea.hbm %s1234_s0, 256 }
  0x1f   : > { %p863_p0 = scmp.lt.s32.totalorder %s856_s14, %s1234_s0  ;;  %p864_p5 = scmp.lt.s32.totalorder %s862_s10, %s857_s15 }
  0x20   : > { %p860_p12 = pnand %p859_p10, %p858_p9 }
  0x21   : > { %p865_p7 = por %p864_p5, %p863_p0 }
  0x22   : > { %p861_p13 = pneg %p860_p12 }
  0x24   : > { %p866_p11 = pnand %p865_p7, %p861_p13 }
  0x26   : > { %869 = shalt.err (!%p866_p11)
}
  0x27   : > { %s1248_s30 = smov 8   ;;  %s1249_s13 = smov 128  }
  0x28   : > { %743 = dma.hbm_to_vmem [thread:$0]  (!%p1083_p2), %s246_s17, 2048, %s248_s16, %s236_s19, %s1249_s13, %s1249_s13, %s1248_s30  }
  0x29   : > { %259 = sbr.rel (%p1041_p8) target bundleno = 413 (0x19d), region = 44  ;;  %s1103_s9 = sand.u32 (!%p1041_p8), 1, %s947_s22  }
  0x2a   : > { %s678_s14 = sshll.u32 (!%p1041_p8), %s1103_s9, 7  ;;  %s262_s15 = scalar_lea.sflag (!%p1041_p8), [#allocation3], %s1103_s9 }
  0x2b   : > { %s1109_s7 = scalar_lea.vmem (!%p1041_p8), [#allocation2], %s678_s14 }
  0x2e   : > { %930 = dma.done.wait (%p1028_p4), %s262_s15, 2048  }
  0x2f   : > { %932 = vsyncadd (%p1028_p4), %s262_s15, 4294965248 }
  0x30   : > { %934 = dma.done.wait (%p44_p1), [#allocation6], 4096  }
  0x31   : > { %936 = vsyncadd (%p44_p1), [#allocation6], 4294963200  ;;  %v338_v0 = vld [vmem:[#allocation5 + $0x78] sm:$0xff]  ;;  %v337_v1 = vld [vmem:[#allocation5 + $0x70] sm:$0xff]  ;;  %s1182_s10 = scalar_lea.vmem [#allocation8], %s678_s14  ;;  %s688_s11 = sshll.u32 %s1019_s25, 7 }
  0x32   : > { %689 = vmatpush.msra.mxu2 %v338_v0  ;;  %339 = vmatpush.msra.mxu0 %v338_v0  ;;  %v336_v2 = vld [vmem:[#allocation5 + $0x68] sm:$0xff]  ;;  %v335_v3 = vld [vmem:[#allocation5 + $0x60] sm:$0xff]  ;;  %v334_v4 = vld [vmem:[#allocation5 + $0x58] sm:$0xff]  ;;  %s573_s13 = scalar_lea.hbm %s1240_s6, %s688_s11  ;;  %s574_s14 = sshll.u32 %s1182_s10, 4  ;;  %s575_s14 = int_to_ptr.vmem [resolvable:$true] %s574_s14 }
  0x33   : > { %v333_v5 = vld [vmem:[#allocation5 + $0x50] sm:$0xff]  ;;  %v332_v6 = vld [vmem:[#allocation5 + $0x48] sm:$0xff]  ;;  %v331_v7 = vld [vmem:[#allocation5 + $0x40] sm:$0xff]  ;;  %s576_s15 = sshll.u32 %s573_s13, 4  ;;  %s905_s17 = scalar_lea.hbm %s1240_s6, 256  ;;  %s577_s15 = int_to_ptr.hbm [resolvable:$true] %s576_s15 }
  0x34   : > { %690 = vmatpush.msra.mxu2 %v337_v1  ;;  %340 = vmatpush.msra.mxu0 %v337_v1  ;;  %v330_v8 = vld [vmem:[#allocation5 + $0x38] sm:$0xff]  ;;  %v329_v9 = vld [vmem:[#allocation5 + $0x30] sm:$0xff]  ;;  %v328_v10 = vld [vmem:[#allocation5 + $0x28] sm:$0xff]  ;;  %s899_s27 = sshra.s32 %s577_s15, 4  ;;  %s900_s27 = int_to_ptr.hbm [resolvable:$true] %s899_s27 }
  0x35   : > { %v327_v11 = vld [vmem:[#allocation5 + $0x20] sm:$0xff]  ;;  %v326_v12 = vld [vmem:[#allocation5 + $0x18] sm:$0xff]  ;;  %v325_v13 = vld [vmem:[#allocation5 + $0x10] sm:$0xff]  ;;  %s901_s8 = scalar_lea.hbm %s900_s27, 128  ;;  %p906_p11 = scmp.lt.s32.totalorder %s900_s27, %s1240_s6 }
  0x36   : > { %691 = vmatpush.msra.mxu2 %v336_v2  ;;  %341 = vmatpush.msra.mxu0 %v336_v2  ;;  %v324_v14 = vld [vmem:[#allocation5 + $0x8] sm:$0xff]  ;;  %v323_v15 = vld [vmem:[#allocation5] sm:$0xff]  ;;  %v317_v20 = vld [vmem:[%s1109_s7 + $0x50] sm:$0xff]  ;;  %p902_p1 = scmp.ne.s32.totalorder %s900_s27, %s901_s8  ;;  %p907_p2 = scmp.lt.s32.totalorder %s905_s17, %s901_s8 }
  0x37   : > { %v315_v16 = vld [vmem:[%s1109_s7 + $0x40] sm:$0xff]  ;;  %v316_v18 = vld [vmem:[%s1109_s7 + $0x48] sm:$0xff]  ;;  %v309_v21 = vld [vmem:[%s1109_s7 + $0x10] sm:$0xff] }
  0x38   : > { %692 = vmatpush.msra.mxu2 %v335_v3  ;;  %342 = vmatpush.msra.mxu0 %v335_v3  ;;  %v307_v17 = vld [vmem:[%s1109_s7] sm:$0xff]  ;;  %v308_v19 = vld [vmem:[%s1109_s7 + $0x8] sm:$0xff]  ;;  %v318_v22 = vld [vmem:[%s1109_s7 + $0x58] sm:$0xff]  ;;  %p903_p4 = pnand %p902_p1, %p1070_p3  ;;  %p908_p9 = por %p907_p2, %p906_p11 }
  0x39   : > { %v310_v23 = vld [vmem:[%s1109_s7 + $0x18] sm:$0xff]  ;;  %v474_v25 = vld [vmem:[#allocation7 + $0x70] sm:$0xff]  ;;  %v473_v26 = vld [vmem:[#allocation7 + $0x68] sm:$0xff] }
  0x3a   : > { %693 = vmatpush.msra.mxu2 %v334_v4  ;;  %343 = vmatpush.msra.mxu0 %v334_v4  ;;  %v475_v24 = vld [vmem:[#allocation7 + $0x78] sm:$0xff]  ;;  %v472_v27 = vld [vmem:[#allocation7 + $0x60] sm:$0xff]  ;;  %v470_v31 = vld [vmem:[#allocation7 + $0x50] sm:$0xff]  ;;  %p904_p8 = pneg %p903_p4 }
  0x3b   : > { %705 = vmatpush.msra.mxu3 %v475_v24  ;;  %480 = vmatpush.msra.mxu1 %v475_v24  ;;  %v319_v28 = vld [vmem:[%s1109_s7 + $0x60] sm:$0xff]  ;;  %v471_v30 = vld [vmem:[#allocation7 + $0x58] sm:$0xff]  ;;  %v469_v32 = vld [vmem:[#allocation7 + $0x48] sm:$0xff] }
  0x3c   : > { %694 = vmatpush.msra.mxu2 %v333_v5  ;;  %344 = vmatpush.msra.mxu0 %v333_v5  ;;  %v311_v29 = vld [vmem:[%s1109_s7 + $0x20] sm:$0xff]  ;;  %v320_v34 = vld [vmem:[%s1109_s7 + $0x68] sm:$0xff]  ;;  %v467_v36 = vld [vmem:[#allocation7 + $0x38] sm:$0xff]  ;;  %p909_p10 = pnand %p908_p9, %p904_p8 }
  0x3d   : > { %706 = vmatpush.msra.mxu3 %v474_v25  ;;  %481 = vmatpush.msra.mxu1 %v474_v25  ;;  %v468_v33 = vld [vmem:[#allocation7 + $0x40] sm:$0xff]  ;;  %v312_v35 = vld [vmem:[%s1109_s7 + $0x28] sm:$0xff]  ;;  %v466_v37 = vld [vmem:[#allocation7 + $0x30] sm:$0xff] }
  0x3e   : > { %695 = vmatpush.msra.mxu2 %v332_v6  ;;  %345 = vmatpush.msra.mxu0 %v332_v6  ;;  %v465_v38 = vld [vmem:[#allocation7 + $0x28] sm:$0xff]  ;;  %v464_v39 = vld [vmem:[#allocation7 + $0x20] sm:$0xff]  ;;  %v321_v40 = vld [vmem:[%s1109_s7 + $0x70] sm:$0xff] }
  0x3f   : > { %707 = vmatpush.msra.mxu3 %v473_v26  ;;  %482 = vmatpush.msra.mxu1 %v473_v26  ;;  %v313_v41 = vld [vmem:[%s1109_s7 + $0x30] sm:$0xff]  ;;  %v322_v42 = vld [vmem:[%s1109_s7 + $0x78] sm:$0xff]  ;;  %v461_v46 = vld [vmem:[#allocation7 + $0x8] sm:$0xff] }
  0x40   : > { %696 = vmatpush.msra.mxu2 %v331_v7  ;;  %346 = vmatpush.msra.mxu0 %v331_v7  ;;  %v314_v43 = vld [vmem:[%s1109_s7 + $0x38] sm:$0xff]  ;;  %v462_v45 = vld [vmem:[#allocation7 + $0x10] sm:$0xff]  ;;  %v460_v47 = vld [vmem:[#allocation7] sm:$0xff]  ;;  %s562_s7 = scalar_lea.sflag [#allocation4], %s1103_s9 }
  0x41   : > { %708 = vmatpush.msra.mxu3 %v472_v27  ;;  %483 = vmatpush.msra.mxu1 %v472_v27  ;;  %v463_v44 = vld [vmem:[#allocation7 + $0x18] sm:$0xff]  ;;  %v1138_v48 = vld [vmem:[%s1236_s2] ss:$0 sm:$0xff] }
  0x42   : > { %697 = vmatpush.msra.mxu2 %v330_v8  ;;  %347 = vmatpush.msra.mxu0 %v330_v8  ;;  %v1144_v51 = vld [vmem:[%s1237_s3] ss:$0 sm:$0xff] }
  0x43   : > { %709 = vmatpush.msra.mxu3 %v471_v30  ;;  %484 = vmatpush.msra.mxu1 %v471_v30 }
  0x44   : > { %698 = vmatpush.msra.mxu2 %v329_v9  ;;  %348 = vmatpush.msra.mxu0 %v329_v9 }
  0x45   : > { %710 = vmatpush.msra.mxu3 %v470_v31  ;;  %485 = vmatpush.msra.mxu1 %v470_v31 }
  0x46   : > { %699 = vmatpush.msra.mxu2 %v328_v10  ;;  %349 = vmatpush.msra.mxu0 %v328_v10 }
  0x47   : > { %711 = vmatpush.msra.mxu3 %v469_v32  ;;  %486 = vmatpush.msra.mxu1 %v469_v32 }
  0x48   : > { %700 = vmatpush.msra.mxu2 %v327_v11  ;;  %350 = vmatpush.msra.mxu0 %v327_v11 }
  0x49   : > { %712 = vmatpush.msra.mxu3 %v468_v33  ;;  %487 = vmatpush.msra.mxu1 %v468_v33 }
  0x4a   : > { %701 = vmatpush.msra.mxu2 %v326_v12  ;;  %351 = vmatpush.msra.mxu0 %v326_v12 }
  0x4b   : > { %713 = vmatpush.msra.mxu3 %v467_v36  ;;  %488 = vmatpush.msra.mxu1 %v467_v36 }
  0x4c   : > { %702 = vmatpush.msra.mxu2 %v325_v13  ;;  %352 = vmatpush.msra.mxu0 %v325_v13 }
  0x4d   : > { %714 = vmatpush.msra.mxu3 %v466_v37  ;;  %489 = vmatpush.msra.mxu1 %v466_v37 }
  0x4e   : > { %703 = vmatpush.msra.mxu2 %v324_v14  ;;  %353 = vmatpush.msra.mxu0 %v324_v14 }
  0x4f   : > { %715 = vmatpush.msra.mxu3 %v465_v38  ;;  %490 = vmatpush.msra.mxu1 %v465_v38 }
  0x50   : > { %704 = vmatpush.msra.mxu2 %v323_v15  ;;  %354 = vmatpush.msra.mxu0 %v323_v15 }
  0x51   : > { %379 = vmatmul.f32.vlgmr.msra.gmra.mxu2 %v315_v16  ;;  %355 = vmatmul.f32.vlgmr.msra.gmra.mxu0 %v307_v17 }
  0x52   : > { %716 = vmatpush.msra.mxu3 %v464_v39  ;;  %491 = vmatpush.msra.mxu1 %v464_v39 }
  0x54   : > { %717 = vmatpush.msra.mxu3 %v463_v44  ;;  %492 = vmatpush.msra.mxu1 %v463_v44 }
  0x56   : > { %718 = vmatpush.msra.mxu3 %v462_v45  ;;  %493 = vmatpush.msra.mxu1 %v462_v45 }
  0x58   : > { %719 = vmatpush.msra.mxu3 %v461_v46  ;;  %494 = vmatpush.msra.mxu1 %v461_v46 }
  0x59   : > { %382 = vmatmul.f32.gmra.mxu2 %v316_v18  ;;  %358 = vmatmul.f32.gmra.mxu0 %v308_v19 }
  0x5a   : > { %720 = vmatpush.msra.mxu3 %v460_v47  ;;  %495 = vmatpush.msra.mxu1 %v460_v47 }
  0x61   : > { %385 = vmatmul.f32.gmra.mxu2 %v317_v20  ;;  %361 = vmatmul.f32.gmra.mxu0 %v309_v21 }
  0x69   : > { %388 = vmatmul.f32.gmra.mxu2 %v318_v22  ;;  %364 = vmatmul.f32.gmra.mxu0 %v310_v23 }
  0x71   : > { %391 = vmatmul.f32.gmra.mxu2 %v319_v28  ;;  %367 = vmatmul.f32.gmra.mxu0 %v311_v29 }
  0x79   : > { %394 = vmatmul.f32.gmra.mxu2 %v320_v34  ;;  %370 = vmatmul.f32.gmra.mxu0 %v312_v35 }
  0x81   : > { %397 = vmatmul.f32.gmra.mxu2 %v321_v40  ;;  %373 = vmatmul.f32.gmra.mxu0 %v313_v41 }
  0x89   : > { %400 = vmatmul.f32.gmra.mxu2 %v322_v42  ;;  %376 = vmatmul.f32.gmra.mxu0 %v314_v43 }
  0xce   : > { %v356_v49 = vpop.f32.mrf.mxu0 }
  0xcf   : > { %v408_v50 = vmul.f32 %v1138_v48, %v356_v49 }
  0xd1   : > { %v428_v52 = vadd.f32 %v1144_v51, %v408_v50 }
  0xd3   : > { %v444_v53 = vmax.f32 %v428_v52, 0.0  ;;  %v794_v52 = vld [vmem:[%s1239_s5] ss:$0 sm:$0xff] }
  0xd4   : > { %v380_v54 = vpop.f32.mrf.mxu2 }
  0xd5   : > { %v416_v55 = vmul.f32 %v1138_v48, %v380_v54  ;;  %496 = vmatmul.f32.vlgmr.msra.gmra.mxu1 %v444_v53 }
  0xd6   : > { %v359_v56 = vpop.f32.mrf.mxu0 }
  0xd7   : > { %v436_v57 = vadd.f32 %v1144_v51, %v416_v55  ;;  %v409_v58 = vmul.f32 %v1138_v48, %v359_v56 }
  0xd9   : > { %v452_v59 = vmax.f32 %v436_v57, 0.0  ;;  %v429_v60 = vadd.f32 %v1144_v51, %v409_v58 }
  0xdb   : > { %520 = vmatmul.f32.vlgmr.msra.gmra.mxu3 %v452_v59  ;;  %v445_v61 = vmax.f32 %v429_v60, 0.0 }
  0xdc   : > { %v383_v62 = vpop.f32.mrf.mxu2 }
  0xdd   : > { %v417_v63 = vmul.f32 %v1138_v48, %v383_v62  ;;  %499 = vmatmul.f32.gmra.mxu1 %v445_v61 }
  0xde   : > { %v362_v0 = vpop.f32.mrf.mxu0 }
  0xdf   : > { %v437_v1 = vadd.f32 %v1144_v51, %v417_v63  ;;  %v410_v2 = vmul.f32 %v1138_v48, %v362_v0 }
  0xe1   : > { %v453_v3 = vmax.f32 %v437_v1, 0.0  ;;  %v430_v4 = vadd.f32 %v1144_v51, %v410_v2 }
  0xe3   : > { %523 = vmatmul.f32.gmra.mxu3 %v453_v3  ;;  %v446_v5 = vmax.f32 %v430_v4, 0.0 }
  0xe4   : > { %v386_v6 = vpop.f32.mrf.mxu2 }
  0xe5   : > { %v418_v7 = vmul.f32 %v1138_v48, %v386_v6  ;;  %502 = vmatmul.f32.gmra.mxu1 %v446_v5 }
  0xe6   : > { %v365_v8 = vpop.f32.mrf.mxu0 }
  0xe7   : > { %v438_v9 = vadd.f32 %v1144_v51, %v418_v7  ;;  %v411_v10 = vmul.f32 %v1138_v48, %v365_v8 }
  0xe9   : > { %v454_v11 = vmax.f32 %v438_v9, 0.0  ;;  %v431_v12 = vadd.f32 %v1144_v51, %v411_v10 }
  0xeb   : > { %526 = vmatmul.f32.gmra.mxu3 %v454_v11  ;;  %v447_v13 = vmax.f32 %v431_v12, 0.0 }
  0xec   : > { %v389_v14 = vpop.f32.mrf.mxu2 }
  0xed   : > { %v419_v15 = vmul.f32 %v1138_v48, %v389_v14  ;;  %505 = vmatmul.f32.gmra.mxu1 %v447_v13 }
  0xee   : > { %v368_v16 = vpop.f32.mrf.mxu0 }
  0xef   : > { %v439_v17 = vadd.f32 %v1144_v51, %v419_v15  ;;  %v412_v18 = vmul.f32 %v1138_v48, %v368_v16 }
  0xf1   : > { %v455_v19 = vmax.f32 %v439_v17, 0.0  ;;  %v432_v20 = vadd.f32 %v1144_v51, %v412_v18 }
  0xf3   : > { %529 = vmatmul.f32.gmra.mxu3 %v455_v19  ;;  %v448_v21 = vmax.f32 %v432_v20, 0.0 }
  0xf4   : > { %v392_v22 = vpop.f32.mrf.mxu2 }
  0xf5   : > { %v420_v23 = vmul.f32 %v1138_v48, %v392_v22  ;;  %508 = vmatmul.f32.gmra.mxu1 %v448_v21 }
  0xf6   : > { %v371_v24 = vpop.f32.mrf.mxu0 }
  0xf7   : > { %v440_v25 = vadd.f32 %v1144_v51, %v420_v23  ;;  %v413_v26 = vmul.f32 %v1138_v48, %v371_v24 }
  0xf9   : > { %v456_v27 = vmax.f32 %v440_v25, 0.0  ;;  %v433_v28 = vadd.f32 %v1144_v51, %v413_v26 }
  0xfb   : > { %532 = vmatmul.f32.gmra.mxu3 %v456_v27  ;;  %v449_v29 = vmax.f32 %v433_v28, 0.0 }
  0xfc   : > { %v395_v30 = vpop.f32.mrf.mxu2 }
  0xfd   : > { %v421_v31 = vmul.f32 %v1138_v48, %v395_v30  ;;  %511 = vmatmul.f32.gmra.mxu1 %v449_v29 }
  0xfe   : > { %v374_v32 = vpop.f32.mrf.mxu0 }
  0xff   : > { %v441_v33 = vadd.f32 %v1144_v51, %v421_v31  ;;  %v414_v34 = vmul.f32 %v1138_v48, %v374_v32 }
 0x101   : > { %v457_v35 = vmax.f32 %v441_v33, 0.0  ;;  %v434_v36 = vadd.f32 %v1144_v51, %v414_v34 }
 0x103   : > { %535 = vmatmul.f32.gmra.mxu3 %v457_v35  ;;  %v450_v37 = vmax.f32 %v434_v36, 0.0 }
 0x104   : > { %v398_v38 = vpop.f32.mrf.mxu2 }
 0x105   : > { %v422_v39 = vmul.f32 %v1138_v48, %v398_v38  ;;  %514 = vmatmul.f32.gmra.mxu1 %v450_v37 }
 0x106   : > { %v377_v40 = vpop.f32.mrf.mxu0 }
 0x107   : > { %v442_v41 = vadd.f32 %v1144_v51, %v422_v39  ;;  %v415_v42 = vmul.f32 %v1138_v48, %v377_v40 }
 0x109   : > { %v458_v43 = vmax.f32 %v442_v41, 0.0  ;;  %v435_v44 = vadd.f32 %v1144_v51, %v415_v42 }
 0x10b   : > { %538 = vmatmul.f32.gmra.mxu3 %v458_v43  ;;  %v451_v45 = vmax.f32 %v435_v44, 0.0 }
 0x10c   : > { %v401_v46 = vpop.f32.mrf.mxu2 }
 0x10d   : > { %v423_v47 = vmul.f32 %v1138_v48, %v401_v46  ;;  %517 = vmatmul.f32.gmra.mxu1 %v451_v45 }
 0x10f   : > { %v443_v49 = vadd.f32 %v1144_v51, %v423_v47 }
 0x111   : > { %v459_v50 = vmax.f32 %v443_v49, 0.0 }
 0x113   : > { %541 = vmatmul.f32.gmra.mxu3 %v459_v50 }
 0x152   : > { %v497_v53 = vpop.f32.mrf.mxu1 }
 0x153   : > { %v498_v54 = vadd.f32 %v794_v52, %v497_v53 }
 0x155   : > { %545 = vst [vmem:[%s1182_s10] sm:$0xff] %v498_v54 }
 0x15a   : > { %v500_v48 = vpop.f32.mrf.mxu1 }
 0x15b   : > { %v501_v51 = vadd.f32 %v794_v52, %v500_v48 }
 0x15d   : > { %546 = vst [vmem:[%s1182_s10 + $0x8] sm:$0xff] %v501_v51 }
 0x15e   : > { %v521_v55 = vpop.f32.mrf.mxu3 }
 0x15f   : > { %v522_v56 = vadd.f32 %v794_v52, %v521_v55 }
 0x161   : > { %553 = vst [vmem:[%s1182_s10 + $0x40] sm:$0xff] %v522_v56 }
 0x162   : > { %v503_v57 = vpop.f32.mrf.mxu1 }
 0x163   : > { %v504_v58 = vadd.f32 %v794_v52, %v503_v57 }
 0x165   : > { %547 = vst [vmem:[%s1182_s10 + $0x10] sm:$0xff] %v504_v58 }
 0x166   : > { %v524_v59 = vpop.f32.mrf.mxu3 }
 0x167   : > { %v525_v60 = vadd.f32 %v794_v52, %v524_v59 }
 0x169   : > { %554 = vst [vmem:[%s1182_s10 + $0x48] sm:$0xff] %v525_v60 }
 0x16a   : > { %v506_v61 = vpop.f32.mrf.mxu1 }
 0x16b   : > { %v507_v62 = vadd.f32 %v794_v52, %v506_v61 }
 0x16d   : > { %548 = vst [vmem:[%s1182_s10 + $0x18] sm:$0xff] %v507_v62 }
 0x16e   : > { %v527_v63 = vpop.f32.mrf.mxu3 }
 0x16f   : > { %v528_v0 = vadd.f32 %v794_v52, %v527_v63 }
 0x171   : > { %555 = vst [vmem:[%s1182_s10 + $0x50] sm:$0xff] %v528_v0 }
 0x172   : > { %v509_v1 = vpop.f32.mrf.mxu1 }
 0x173   : > { %v510_v2 = vadd.f32 %v794_v52, %v509_v1 }
 0x175   : > { %549 = vst [vmem:[%s1182_s10 + $0x20] sm:$0xff] %v510_v2 }
 0x176   : > { %v530_v3 = vpop.f32.mrf.mxu3 }
 0x177   : > { %v531_v4 = vadd.f32 %v794_v52, %v530_v3 }
 0x179   : > { %556 = vst [vmem:[%s1182_s10 + $0x58] sm:$0xff] %v531_v4 }
 0x17a   : > { %v512_v5 = vpop.f32.mrf.mxu1 }
 0x17b   : > { %v513_v6 = vadd.f32 %v794_v52, %v512_v5 }
 0x17d   : > { %550 = vst [vmem:[%s1182_s10 + $0x28] sm:$0xff] %v513_v6 }
 0x17e   : > { %v533_v7 = vpop.f32.mrf.mxu3 }
 0x17f   : > { %v534_v8 = vadd.f32 %v794_v52, %v533_v7 }
 0x181   : > { %557 = vst [vmem:[%s1182_s10 + $0x60] sm:$0xff] %v534_v8 }
 0x182   : > { %v515_v9 = vpop.f32.mrf.mxu1 }
 0x183   : > { %v516_v10 = vadd.f32 %v794_v52, %v515_v9 }
 0x185   : > { %551 = vst [vmem:[%s1182_s10 + $0x30] sm:$0xff] %v516_v10 }
 0x186   : > { %v536_v11 = vpop.f32.mrf.mxu3 }
 0x187   : > { %v537_v12 = vadd.f32 %v794_v52, %v536_v11 }
 0x189   : > { %558 = vst [vmem:[%s1182_s10 + $0x68] sm:$0xff] %v537_v12 }
 0x18a   : > { %v518_v13 = vpop.f32.mrf.mxu1 }
 0x18b   : > { %v519_v14 = vadd.f32 %v794_v52, %v518_v13 }
 0x18d   : > { %552 = vst [vmem:[%s1182_s10 + $0x38] sm:$0xff] %v519_v14 }
 0x18e   : > { %v539_v15 = vpop.f32.mrf.mxu3 }
 0x18f   : > { %v540_v16 = vadd.f32 %v794_v52, %v539_v15 }
 0x191   : > { %559 = vst [vmem:[%s1182_s10 + $0x70] sm:$0xff] %v540_v16 }
 0x196   : > { %v542_v17 = vpop.f32.mrf.mxu3 }
 0x197   : > { %v543_v18 = vadd.f32 %v794_v52, %v542_v17 }
 0x199   : > { %560 = vst [vmem:[%s1182_s10 + $0x78] sm:$0xff] %v543_v18 }
 0x19a   : > { %912 = shalt.err (!%p909_p10)
}
 0x19b   : > { %s961_s9 = smov 128   ;;  %s962_s10 = smov 8  }
 0x19c   : > { %731 = dma.vmem_to_hbm [thread:$0]  (%p1070_p3), %s575_s14, 2048, %s577_s15, %s562_s7, %s961_s9, %s961_s9, %s962_s10  }
 0x19d PF: > { %s591_s11 = sand.u32 1, %s943_s21   ;;  %p1250_p12 = scmp.ge.s32.totalorder %s955_s24, 2 }
 0x19e   : > { %s592_s12 = scalar_lea.sflag [#allocation4], %s591_s11 }
 0x19f   : > { %p745_p13 = pnand %p1250_p12, %p1033_p6 }
 0x1a1   : > { %p746_p0 = pneg %p745_p13 }
 0x1a3   : > { %938 = dma.done.wait (%p746_p0), %s592_s12, 2048  }
 0x1a4   : > { %940 = vsyncadd (%p746_p0), %s592_s12, 4294965248  ;;  %p20_p5 = scmp.ge.s32.totalorder %s1060_s18, 4   ;;  %s1251_s21 = smov %s947_s22 }
 0x1a5   : > { %s1252_s22 = smov %s951_s23  ;;  %s1253_s23 = smov %s1076_s29 }
 0x1a6   : > { %s1254_s24 = smov %s1060_s18  ;;  %22 = sbr.rel (!%p20_p5) target bundleno = 6 (0x6), region = 97 }
 0x1ab   :  { %598 = vsyncpa [#allocation3], 1 }
 0x1ac   :  { %600 = vsyncpa [#allocation3 + $0x1], 1 }
 0x1ad   :  { %601 = vsyncpa [#allocation6], 1 }
 0x1ae   :  { %602 = vsyncpa [#allocation4], 1 }
 0x1af   :  { %604 = vsyncpa [#allocation4 + $0x1], 1 }

</bundles_post_ra>
